<compile_context>
chip_gen: v7x
topology: tpu7x:2x2x1
jax: 0.10.0
libtpu: 0.0.40
codegen_flags: <defaults>
</compile_context>

<pallas_src>
import functools

import jax
import jax.numpy as jnp
from jax import lax
from jax.experimental import pallas as pl
from jax.experimental.pallas import tpu as pltpu


def _attention_kernel(x_ref, a_ref, w_ref, b_ref, c_ref, o_ref, *,
                      num_heads, attn_dim):
    # x_ref: (1, N, D_in)      current batch element
    # a_ref: (1, N, N)         current batch adjacency
    # w_ref: (D_in, H*A)       fused, pre-transposed projection weights
    # b_ref: (1, H*A)          fused projection bias
    # c_ref: (H*A, H*A)        block-diagonal of per-head C_h^T
    # o_ref: (1, N, H*A)       head-contiguous output block
    x = x_ref[0]          # (N, D_in)
    adj = a_ref[0]        # (N, N)
    w_all = w_ref[...]    # (D_in, H*A)
    b_all = b_ref[...]    # (1, H*A)
    c_all = c_ref[...]    # (H*A, H*A)

    # Fused projection for ALL heads: one MXU matmul instead of H tiny ones.
    xp_all = jnp.dot(x, w_all, preferred_element_type=jnp.float32) + b_all   # (N, H*A)
    # Fused bilinear transform for ALL heads via block-diagonal C^T.
    y_all = jnp.dot(xp_all, c_all, preferred_element_type=jnp.float32)       # (N, H*A)

    # Per-head scores / masking / aggregation (H is small & static -> unrolled).
    outs = []
    for h in range(num_heads):
        lo = h * attn_dim
        xp_h = xp_all[:, lo:lo + attn_dim]     # (N, A)
        y_h = y_all[:, lo:lo + attn_dim]       # (N, A)
        # s_h = y_h @ xp_h^T without an explicit in-kernel transpose.
        s = lax.dot_general(y_h, xp_h, (((1,), (1,)), ((), ())),
                            preferred_element_type=jnp.float32)              # (N, N)
        attn = jnp.tanh(adj * s)
        # TODO(synk): nn.Dropout(p=0.1) is identity in eval mode; training-mode
        # dropout is intentionally not implemented here.
        outs.append(jnp.dot(attn, xp_h, preferred_element_type=jnp.float32))  # (N, A)

    # Single lane-dense store of the final head-contiguous layout + ReLU.
    o_ref[0] = jnp.maximum(jnp.concatenate(outs, axis=-1), 0.0)


def attention_forward(x, a, w, b, c):
    """x: (B, N, D_in), a: (B, N, N), w: (H, attn_dim, D_in),
    b: (H, 1, attn_dim), c: (H, attn_dim, attn_dim) -> (B, N, H*attn_dim)."""
    B, N, D_in = x.shape
    H, A, _ = w.shape
    HA = H * A

    # Host-side parameter fusion (pure layout work, done once):
    #   w_all[d, h*A + a] = w[h, a, d]   -> xp_all = X @ w_all == per-head X @ W_h^T
    w_all = jnp.transpose(w, (2, 0, 1)).reshape(D_in, HA)
    #   b_all[0, h*A + a] = b[h, 0, a]
    b_all = b.reshape(1, HA)
    #   Block-diagonal of C_h^T -> xp_all @ c_all fuses all per-head xp_h @ C_h^T.
    c_all = jax.scipy.linalg.block_diag(*jnp.transpose(c, (0, 2, 1)))        # (HA, HA)

    kernel = functools.partial(_attention_kernel, num_heads=H, attn_dim=A)

    return pl.pallas_call(
        kernel,
        out_shape=jax.ShapeDtypeStruct((B, N, HA), jnp.float32),
        grid_spec=pltpu.PrefetchScalarGridSpec(
            num_scalar_prefetch=0,
            grid=(B,),
            in_specs=[
                pl.BlockSpec((1, N, D_in), lambda bi: (bi, 0, 0)),   # X
                pl.BlockSpec((1, N, N), lambda bi: (bi, 0, 0)),      # A
                pl.BlockSpec((D_in, HA), lambda bi: (0, 0)),         # fused W^T
                pl.BlockSpec((1, HA), lambda bi: (0, 0)),            # fused bias
                pl.BlockSpec((HA, HA), lambda bi: (0, 0)),           # block-diag C^T
            ],
            out_specs=pl.BlockSpec((1, N, HA), lambda bi: (bi, 0, 0)),
        ),
        compiler_params=pltpu.CompilerParams(
            dimension_semantics=("parallel",)),
    )(x, a, w_all, b_all, c_all)


def _reference_forward(x, a, w, b, c):
    # Pure-JAX reference mirroring the PyTorch module (eval mode).
    xp = jnp.einsum('bnd,had->bhna', x, w) + b[None, :, 0, None, :]   # (B,H,N,A)
    y = jnp.einsum('bhna,hia->bhni', xp, c)                           # (B,H,N,A)
    s = jnp.einsum('bhni,bhmi->bhnm', y, xp)                          # (B,H,N,N)
    attn = jnp.tanh(a[:, None] * s)
    xh = jnp.einsum('bhnm,bhma->bhna', attn, xp)
    B, H, N, A = xh.shape
    return jnp.maximum(jnp.transpose(xh, (0, 2, 1, 3)).reshape(B, N, H * A), 0.0)


if __name__ == "__main__":
    # Small shapes consistent with the module's forward.
    B, N, input_dim = 2, 16, 32
    num_heads, output_dim = 4, 32
    attn_dim = output_dim // num_heads  # 8

    key = jax.random.PRNGKey(0)
    kx, ka, kw, kb, kc = jax.random.split(key, 5)

    x = jax.random.normal(kx, (B, N, input_dim), dtype=jnp.float32)
    # 0/1 adjacency
    a = (jax.random.uniform(ka, (B, N, N)) < 0.5).astype(jnp.float32)

    # Deterministic xavier-normal-style init (per-head Linear weights and C).
    std_w = (2.0 / (input_dim + attn_dim)) ** 0.5
    std_c = (2.0 / (attn_dim + attn_dim)) ** 0.5
    w = std_w * jax.random.normal(kw, (num_heads, attn_dim, input_dim), dtype=jnp.float32)
    b = 0.01 * jax.random.normal(kb, (num_heads, 1, attn_dim), dtype=jnp.float32)
    c = std_c * jax.random.normal(kc, (num_heads, attn_dim, attn_dim), dtype=jnp.float32)

    out = attention_forward(x, a, w, b, c)
    out = jax.block_until_ready(out)

    ref = _reference_forward(x, a, w, b, c)
    assert out.shape == (B, N, output_dim)
    assert jnp.allclose(out, ref, atol=1e-4, rtol=1e-4)

    print("KERNEL_OK")
</pallas_src>

<mosaic_0001>
module attributes {stable_mosaic.version = 11 : i64} {
  func.func @_attention_kernel(%arg0: i32, %arg1: memref<1x16x32xf32, #tpu.memory_space<vmem>>, %arg2: memref<1x16x16xf32, #tpu.memory_space<vmem>>, %arg3: memref<32x32xf32, #tpu.memory_space<vmem>>, %arg4: memref<1x32xf32, #tpu.memory_space<vmem>>, %arg5: memref<32x32xf32, #tpu.memory_space<vmem>>, %arg6: memref<1x16x32xf32, #tpu.memory_space<vmem>>) attributes {dimension_semantics = [#tpu.dimension_semantics<parallel>], iteration_bounds = array<i64: 2>, scalar_prefetch = 0 : i64, scratch_operands = 0 : i64, tpu.core_type = #tpu.core_type<tc>, window_params = [{transform_indices = @transform_0, window_bounds = array<i64: 1, 16, 32>}, {transform_indices = @transform_1, window_bounds = array<i64: 1, 16, 16>}, {pipeline_mode = #tpu.pipeline_mode<synchronous>, transform_indices = @transform_2, window_bounds = array<i64: 32, 32>}, {pipeline_mode = #tpu.pipeline_mode<synchronous>, transform_indices = @transform_3, window_bounds = array<i64: 1, 32>}, {pipeline_mode = #tpu.pipeline_mode<synchronous>, transform_indices = @transform_4, window_bounds = array<i64: 32, 32>}, {transform_indices = @transform_5, window_bounds = array<i64: 1, 16, 32>}]} {
    %c0 = arith.constant 0 : index
    %c0_0 = arith.constant 0 : index
    %c0_1 = arith.constant 0 : index
    %0 = vector.load %arg1[%c0, %c0_0, %c0_1] : memref<1x16x32xf32, #tpu.memory_space<vmem>>, vector<1x16x32xf32>
    %1 = vector.shape_cast %0 : vector<1x16x32xf32> to vector<16x32xf32>
    %c0_2 = arith.constant 0 : index
    %c0_3 = arith.constant 0 : index
    %c0_4 = arith.constant 0 : index
    %2 = vector.load %arg2[%c0_2, %c0_3, %c0_4] : memref<1x16x16xf32, #tpu.memory_space<vmem>>, vector<1x16x16xf32>
    %3 = vector.shape_cast %2 : vector<1x16x16xf32> to vector<16x16xf32>
    %c0_5 = arith.constant 0 : index
    %c0_6 = arith.constant 0 : index
    %4 = vector.load %arg3[%c0_5, %c0_6] : memref<32x32xf32, #tpu.memory_space<vmem>>, vector<32x32xf32>
    %c0_7 = arith.constant 0 : index
    %c0_8 = arith.constant 0 : index
    %5 = vector.load %arg4[%c0_7, %c0_8] : memref<1x32xf32, #tpu.memory_space<vmem>>, vector<1x32xf32>
    %c0_9 = arith.constant 0 : index
    %c0_10 = arith.constant 0 : index
    %6 = vector.load %arg5[%c0_9, %c0_10] : memref<32x32xf32, #tpu.memory_space<vmem>>, vector<32x32xf32>
    %cst = arith.constant dense<0.000000e+00> : vector<16x32xf32>
    %7 = tpu.matmul %1, %4, %cst {dimension_numbers = #tpu.dot_dimension_numbers<[1], [0], [0], [1], [0, 0, 1, 1], [], []>} : vector<16x32xf32>, vector<32x32xf32>, vector<16x32xf32> -> vector<16x32xf32>
    %8 = vector.broadcast %5 : vector<1x32xf32> to vector<16x32xf32>
    %9 = arith.addf %7, %8 : vector<16x32xf32>
    %cst_11 = arith.constant dense<0.000000e+00> : vector<16x32xf32>
    %10 = tpu.matmul %9, %6, %cst_11 {dimension_numbers = #tpu.dot_dimension_numbers<[1], [0], [0], [1], [0, 0, 1, 1], [], []>} : vector<16x32xf32>, vector<32x32xf32>, vector<16x32xf32> -> vector<16x32xf32>
    %11 = vector.extract_strided_slice %9 {offsets = [0, 0], sizes = [16, 8], strides = [1, 1]} : vector<16x32xf32> to vector<16x8xf32>
    %12 = vector.extract_strided_slice %10 {offsets = [0, 0], sizes = [16, 8], strides = [1, 1]} : vector<16x32xf32> to vector<16x8xf32>
    %cst_12 = arith.constant dense<0.000000e+00> : vector<16x16xf32>
    %13 = tpu.matmul %12, %11, %cst_12 {dimension_numbers = #tpu.dot_dimension_numbers<[1], [1], [0], [0], [0, 0, 1, 0], [], []>} : vector<16x8xf32>, vector<16x8xf32>, vector<16x16xf32> -> vector<16x16xf32>
    %14 = arith.mulf %3, %13 : vector<16x16xf32>
    %15 = math.tanh %14 : vector<16x16xf32>
    %cst_13 = arith.constant dense<0.000000e+00> : vector<16x8xf32>
    %16 = tpu.matmul %15, %11, %cst_13 {dimension_numbers = #tpu.dot_dimension_numbers<[1], [0], [0], [1], [0, 0, 1, 1], [], []>} : vector<16x16xf32>, vector<16x8xf32>, vector<16x8xf32> -> vector<16x8xf32>
    %17 = vector.extract_strided_slice %9 {offsets = [0, 8], sizes = [16, 8], strides = [1, 1]} : vector<16x32xf32> to vector<16x8xf32>
    %18 = vector.extract_strided_slice %10 {offsets = [0, 8], sizes = [16, 8], strides = [1, 1]} : vector<16x32xf32> to vector<16x8xf32>
    %cst_14 = arith.constant dense<0.000000e+00> : vector<16x16xf32>
    %19 = tpu.matmul %18, %17, %cst_14 {dimension_numbers = #tpu.dot_dimension_numbers<[1], [1], [0], [0], [0, 0, 1, 0], [], []>} : vector<16x8xf32>, vector<16x8xf32>, vector<16x16xf32> -> vector<16x16xf32>
    %20 = arith.mulf %3, %19 : vector<16x16xf32>
    %21 = math.tanh %20 : vector<16x16xf32>
    %cst_15 = arith.constant dense<0.000000e+00> : vector<16x8xf32>
    %22 = tpu.matmul %21, %17, %cst_15 {dimension_numbers = #tpu.dot_dimension_numbers<[1], [0], [0], [1], [0, 0, 1, 1], [], []>} : vector<16x16xf32>, vector<16x8xf32>, vector<16x8xf32> -> vector<16x8xf32>
    %23 = vector.extract_strided_slice %9 {offsets = [0, 16], sizes = [16, 8], strides = [1, 1]} : vector<16x32xf32> to vector<16x8xf32>
    %24 = vector.extract_strided_slice %10 {offsets = [0, 16], sizes = [16, 8], strides = [1, 1]} : vector<16x32xf32> to vector<16x8xf32>
    %cst_16 = arith.constant dense<0.000000e+00> : vector<16x16xf32>
    %25 = tpu.matmul %24, %23, %cst_16 {dimension_numbers = #tpu.dot_dimension_numbers<[1], [1], [0], [0], [0, 0, 1, 0], [], []>} : vector<16x8xf32>, vector<16x8xf32>, vector<16x16xf32> -> vector<16x16xf32>
    %26 = arith.mulf %3, %25 : vector<16x16xf32>
    %27 = math.tanh %26 : vector<16x16xf32>
    %cst_17 = arith.constant dense<0.000000e+00> : vector<16x8xf32>
    %28 = tpu.matmul %27, %23, %cst_17 {dimension_numbers = #tpu.dot_dimension_numbers<[1], [0], [0], [1], [0, 0, 1, 1], [], []>} : vector<16x16xf32>, vector<16x8xf32>, vector<16x8xf32> -> vector<16x8xf32>
    %29 = vector.extract_strided_slice %9 {offsets = [0, 24], sizes = [16, 8], strides = [1, 1]} : vector<16x32xf32> to vector<16x8xf32>
    %30 = vector.extract_strided_slice %10 {offsets = [0, 24], sizes = [16, 8], strides = [1, 1]} : vector<16x32xf32> to vector<16x8xf32>
    %cst_18 = arith.constant dense<0.000000e+00> : vector<16x16xf32>
    %31 = tpu.matmul %30, %29, %cst_18 {dimension_numbers = #tpu.dot_dimension_numbers<[1], [1], [0], [0], [0, 0, 1, 0], [], []>} : vector<16x8xf32>, vector<16x8xf32>, vector<16x16xf32> -> vector<16x16xf32>
    %32 = arith.mulf %3, %31 : vector<16x16xf32>
    %33 = math.tanh %32 : vector<16x16xf32>
    %cst_19 = arith.constant dense<0.000000e+00> : vector<16x8xf32>
    %34 = tpu.matmul %33, %29, %cst_19 {dimension_numbers = #tpu.dot_dimension_numbers<[1], [0], [0], [1], [0, 0, 1, 1], [], []>} : vector<16x16xf32>, vector<16x8xf32>, vector<16x8xf32> -> vector<16x8xf32>
    %35 = tpu.concatenate %16, %22, %28, %34 in 1 : vector<16x8xf32>, vector<16x8xf32>, vector<16x8xf32>, vector<16x8xf32> -> vector<16x32xf32>
    %cst_20 = arith.constant 0.000000e+00 : f32
    %36 = vector.broadcast %cst_20 : f32 to vector<16x32xf32>
    %37 = arith.maximumf %35, %36 : vector<16x32xf32>
    %c0_21 = arith.constant 0 : index
    %c0_22 = arith.constant 0 : index
    %c0_23 = arith.constant 0 : index
    %38 = vector.load %arg6[%c0_21, %c0_22, %c0_23] : memref<1x16x32xf32, #tpu.memory_space<vmem>>, vector<1x16x32xf32>
    %39 = vector.shape_cast %38 : vector<1x16x32xf32> to vector<16x32xf32>
    %40 = vector.shape_cast %37 : vector<16x32xf32> to vector<1x16x32xf32>
    tpu.vector_store %arg6[%c0_21, %c0_22, %c0_23], %40 {strides = array<i32>} : memref<1x16x32xf32, #tpu.memory_space<vmem>>, vector<1x16x32xf32>,
    return
  }
  func.func @transform_0(%arg0: i32) -> (i32, i32, i32) {
    %c0_i32 = arith.constant 0 : i32
    %c0_i32_0 = arith.constant 0 : i32
    %c0_i32_1 = arith.constant 0 : i32
    return %arg0, %c0_i32, %c0_i32_0 : i32, i32, i32
  }
  func.func @transform_1(%arg0: i32) -> (i32, i32, i32) {
    %c0_i32 = arith.constant 0 : i32
    %c0_i32_0 = arith.constant 0 : i32
    %c0_i32_1 = arith.constant 0 : i32
    return %arg0, %c0_i32, %c0_i32_0 : i32, i32, i32
  }
  func.func @transform_2(%arg0: i32) -> (i32, i32) {
    %c0_i32 = arith.constant 0 : i32
    %c0_i32_0 = arith.constant 0 : i32
    %c0_i32_1 = arith.constant 0 : i32
    return %c0_i32, %c0_i32_0 : i32, i32
  }
  func.func @transform_3(%arg0: i32) -> (i32, i32) {
    %c0_i32 = arith.constant 0 : i32
    %c0_i32_0 = arith.constant 0 : i32
    %c0_i32_1 = arith.constant 0 : i32
    return %c0_i32, %c0_i32_0 : i32, i32
  }
  func.func @transform_4(%arg0: i32) -> (i32, i32) {
    %c0_i32 = arith.constant 0 : i32
    %c0_i32_0 = arith.constant 0 : i32
    %c0_i32_1 = arith.constant 0 : i32
    return %c0_i32, %c0_i32_0 : i32, i32
  }
  func.func @transform_5(%arg0: i32) -> (i32, i32, i32) {
    %c0_i32 = arith.constant 0 : i32
    %c0_i32_0 = arith.constant 0 : i32
    %c0_i32_1 = arith.constant 0 : i32
    return %arg0, %c0_i32, %c0_i32_0 : i32, i32, i32
  }
}

</mosaic_0001>

<bundles_post_ra>
// kernel: tpu_custom_call.1
= control target key start
LH: loop header
LB: loop body
LE: loop exit
PB: predicated region body
PF: predicated region fallthrough
CT: control target
= control target key end

     0   :  { %s2321_s0 = inlined_call_operand.hbm [shape: f32[2,16,32], index: 0, kind: input, shape index: {}]   ;;  %s2322_s1 = inlined_call_operand.hbm [shape: f32[2,16,16], index: 1, kind: input, shape index: {}]   ;;  %s2323_s2 = inlined_call_operand.hbm [shape: f32[32,32], index: 2, kind: input, shape index: {}]   ;;  %s2324_s3 = inlined_call_operand.vmem [shape: f32[1,32], index: 3, kind: input, shape index: {}]   ;;  %s2325_s4 = inlined_call_operand.hbm [shape: f32[32,32], index: 4, kind: input, shape index: {}]   ;;  %s2326_s5 = inlined_call_operand.hbm [shape: f32[2,16,32], index: 5, kind: output, shape index: {}]  }
   0x1   :  { %2334 = sst [smem:[#allocation16_spill]] %s2321_s0 }
   0x2   :  { %2335 = sst [smem:[#allocation17_spill]] %s2323_s2 }
   0x3   :  { %10 = vsyncpa [#allocation3], 0 }
   0x4   :  { %12 = vsyncpa [#allocation3 + $0x1], 0 }
   0x5   :  { %13 = vsyncpa [#allocation6], 0 }
   0x6   :  { %15 = vsyncpa [#allocation6 + $0x1], 0 }
   0x7   :  { %16 = vsyncpa [#allocation9], 0 }
   0x8   :  { %17 = vsyncpa [#allocation4], 0 }
   0x9   :  { %19 = vsyncpa [#allocation4 + $0x1], 0  ;;  %s1948_s18 = smov 0   ;;  %s1950_s19 = smov 0  }
   0xa   :  { %s1952_s20 = smov 0   ;;  %s1954_s21 = smov 0  }
   0xb LB: > { %s1969_s22 = sadd.s32 4294967295, %s1902_s21   ;;  %s1364_s23 = sadd.s32 4294967294, %s1902_s21   ;;  %s1902_s21 = sphi %s1954_s21, %s2360_s21   ;;  %s1898_s20 = sphi %s1952_s20, %s2359_s20   ;;  %s1894_s19 = sphi %s1950_s19, %s2358_s19   ;;  %s1890_s18 = sphi %s1948_s18, %s2357_s18  }
   0xc   : > { %p45_p0 = scmp.ne.s32.totalorder %s1894_s19, %s1890_s18  ;;  %p2327_p1 = scmp.eq.s32.totalorder %s1969_s22, 0 }
   0xd   : > { %p164_p3 = scmp.eq.s32.totalorder %s1364_s23, 1  ;;  %p1365_p5 = scmp.ge.s32.totalorder %s1902_s21, 1 }
   0xe   : > { %p1978_p4 = por %p2327_p1, %p45_p0  ;;  %p171_p7 = scmp.lt.s32.totalorder %s1902_s21, 3 }
   0xf   : > { %p1983_p6 = por %p164_p3, %p45_p0  ;;  %s1904_s27 = smov [#allocation7]  }
  0x10   : > { %s2336_s24 = scalar_select %p1978_p4, 1, 0 }
  0x11   : > { %s2337_s25 = scalar_select %p1983_p6, 1, 0 }
  0x12   : > { %p1988_p8 = pnand %p1365_p5, %p171_p7  ;;  %s183_s28 = sshll.u32 %s1904_s27, 4  ;;  %s1992_s28 = int_to_ptr.vmem [resolvable:$true] %s183_s28 }
  0x13   : > { %s1905_s30 = smov [#allocation8]   ;;  %s2340_s2 = sld [smem:[#allocation17_spill]] }
  0x14   : > { %p1610_p9 = pneg %p1988_p8  ;;  %s199_s6 = sshll.u32 %s1905_s30, 4  ;;  %s2003_s6 = int_to_ptr.vmem [resolvable:$true] %s199_s6 }
  0x16   : > { %p1999_p11 = pnand %p1610_p9, %p2327_p1 }
  0x18   : > { %p1710_p13 = pneg %p1999_p11 }
  0x19   : > { %s1708_s9 = scalar_lea.hbm %s2340_s2, 512 }
  0x1a   : > { %p1709_p12 = scmp.ne.s32.totalorder %s2340_s2, %s1708_s9  ;;  %p1715_p5 = scmp.lt.u32.totalorder %s1708_s9, %s2340_s2 }
  0x1c   : > { %p1711_p0 = pnand %p1710_p13, %p1709_p12 }
  0x1e   : > { %p1712_p3 = pneg %p1711_p0 }
  0x20   : > { %p1717_p7 = pnand %p1715_p5, %p1712_p3 }
  0x22   : > { %1720 = shalt.err (!%p1717_p7)
}
  0x23   : > { %s1721_s14 = scalar_lea.vmem %s1992_s28, 512  ;;  %p1729_p2 = scmp.lt.s32.totalorder %s1992_s28, %s1992_s28 }
  0x24   : > { %p1722_p9 = scmp.ne.s32.totalorder %s1992_s28, %s1721_s14  ;;  %p1730_p12 = scmp.lt.s32.totalorder %s1721_s14, %s1721_s14 }
  0x26   : > { %p1724_p10 = pnand %p1722_p9, %p1710_p13  ;;  %p1731_p0 = por %p1730_p12, %p1729_p2 }
  0x28   : > { %p1725_p1 = pneg %p1724_p10 }
  0x2a   : > { %p1732_p6 = pnand %p1731_p0, %p1725_p1 }
  0x2c   : > { %1735 = shalt.err (!%p1732_p6)
}
  0x2d   : > { %s2328_s15 = smov 128   ;;  %s2330_s16 = smov 8  }
  0x2e   : > { %1613 = dma.hbm_to_vmem [thread:$0]  (!%p1999_p11), %s2340_s2, 512, %s1992_s28, [#allocation6], %s2328_s15, %s2328_s15, %s2330_s16  }
  0x2f   : > { %s1736_s7 = scalar_lea.hbm %s2325_s4, 512 }
  0x30   : > { %p1737_p1 = scmp.ne.s32.totalorder %s2325_s4, %s1736_s7  ;;  %p1743_p10 = scmp.lt.u32.totalorder %s1736_s7, %s2325_s4 }
  0x32   : > { %p1739_p2 = pnand %p1737_p1, %p1710_p13 }
  0x34   : > { %p1740_p6 = pneg %p1739_p2 }
  0x36   : > { %p1745_p3 = pnand %p1743_p10, %p1740_p6 }
  0x38   : > { %1748 = shalt.err (!%p1745_p3)
}
  0x39   : > { %s1749_s28 = scalar_lea.vmem %s2003_s6, 512  ;;  %p1757_p12 = scmp.lt.s32.totalorder %s2003_s6, %s2003_s6 }
  0x3a   : > { %p1750_p5 = scmp.ne.s32.totalorder %s2003_s6, %s1749_s28  ;;  %p1758_p0 = scmp.lt.s32.totalorder %s1749_s28, %s1749_s28 }
  0x3c   : > { %p1752_p7 = pnand %p1750_p5, %p1710_p13  ;;  %p1759_p1 = por %p1758_p0, %p1757_p12 }
  0x3e   : > { %p1753_p9 = pneg %p1752_p7 }
  0x40   : > { %p1760_p2 = pnand %p1759_p1, %p1753_p9 }
  0x42   : > { %1763 = shalt.err (!%p1760_p2)
}
  0x43   : > { %1616 = dma.hbm_to_vmem [thread:$0]  (!%p1999_p11), %s2325_s4, 512, %s2003_s6, [#allocation9], %s2328_s15, %s2328_s15, %s2330_s16  }
  0x44   : > { %s2064_s29 = sadd.s32 1, %s1902_s21   ;;  %s32_s14 = sadd.s32 1, %s1898_s20 }
  0x45   : > { %s29_s17 = ssub.s32 %s1902_s21, %s2064_s29  ;;  %p39_p13 = scmp.ne.s32.totalorder %s1898_s20, %s1894_s19 }
  0x46   : > { %p30_p6 = scmp.eq.s32.totalorder %s29_s17, 0  ;;  %p40_p10 = scmp.eq.s32.totalorder %s1902_s21, 0 }
  0x47   : > { %p2341_p3 = scmp.eq.s32.totalorder %s1969_s22, 1  ;;  %p1630_p7 = scmp.lt.s32.totalorder %s1902_s21, 2 }
  0x48   : > { %s2080_s27 = scalar_select %p30_p6, %s1898_s20, %s32_s14  }
  0x49   : > { %p2074_p5 = por %p2341_p3, %p39_p13  ;;  %p41_p9 = por %p40_p10, %p39_p13 }
  0x4a   : > { %s213_s30 = sand.u32 1, %s1898_s20   ;;  %s1415_s6 = sshll.u32 %s1902_s21, 8 }
  0x4b   : > { %s2342_s23 = scalar_select %p2074_p5, 1, 0 }
  0x4c   : > { %s1369_s7 = sshll.u32 %s213_s30, 4  ;;  %s2343_s0 = sld [smem:[#allocation16_spill]] }
  0x4d   : > { %s217_s11 = scalar_lea.vmem [#allocation2], %s1369_s7  ;;  %p2091_p11 = pnand %p1630_p7, %p41_p9 }
  0x4e   : > { %s224_s28 = sshll.u32 %s217_s11, 4  ;;  %s2098_s17 = scalar_lea.hbm %s2322_s1, %s1415_s6  ;;  %s2089_s28 = int_to_ptr.vmem [resolvable:$true] %s224_s28 }
  0x4f   : > { %s238_s8 = scalar_lea.vmem [#allocation5], %s1369_s7  ;;  %s2102_s15 = scalar_lea.sflag [#allocation3], %s213_s30 }
  0x50   : > { %s2100_s9 = sshll.u32 %s238_s8, 4  ;;  %p1766_p0 = pneg %p2091_p11  ;;  %s2134_s9 = int_to_ptr.vmem [resolvable:$true] %s2100_s9 }
  0x52   : > { %s2087_s10 = scalar_lea.hbm %s2343_s0, %s1415_s6  ;;  %s1769_s13 = scalar_lea.hbm %s2343_s0, 512 }
  0x53   : > { %s1764_s11 = scalar_lea.hbm %s2087_s10, 256  ;;  %p1770_p13 = scmp.lt.u32.totalorder %s2087_s10, %s2343_s0 }
  0x54   : > { %p1765_p12 = scmp.ne.s32.totalorder %s2087_s10, %s1764_s11  ;;  %p1771_p6 = scmp.lt.u32.totalorder %s1769_s13, %s1764_s11 }
  0x55   : > { %p1773_p3 = scmp.lt.u32.totalorder %s1764_s11, %s2087_s10 }
  0x56   : > { %p1767_p1 = pnand %p1766_p0, %p1765_p12  ;;  %p1772_p10 = por %p1771_p6, %p1770_p13 }
  0x58   : > { %p1768_p2 = pneg %p1767_p1  ;;  %p1774_p7 = por %p1773_p3, %p1772_p10 }
  0x5a   : > { %p1775_p9 = pnand %p1774_p7, %p1768_p2 }
  0x5c   : > { %1778 = shalt.err (!%p1775_p9)
}
  0x5d   : > { %s1779_s30 = scalar_lea.vmem %s2089_s28, 256  ;;  %s1908_s2 = smov [#allocation2]  }
  0x5e   : > { %p1780_p12 = scmp.ne.s32.totalorder %s2089_s28, %s1779_s30  ;;  %s1784_s16 = sshll.u32 %s1908_s2, 4  ;;  %s1785_s16 = int_to_ptr.vmem [resolvable:$false] %s1784_s16 }
  0x5f   : > { %s1786_s7 = scalar_lea.vmem %s1785_s16, 512  ;;  %p1787_p4 = scmp.lt.s32.totalorder %s2089_s28, %s1785_s16 }
  0x60   : > { %p1782_p1 = pnand %p1780_p12, %p1766_p0  ;;  %p1788_p13 = scmp.lt.s32.totalorder %s1786_s7, %s1779_s30 }
  0x62   : > { %p1783_p5 = pneg %p1782_p1  ;;  %p1789_p6 = por %p1788_p13, %p1787_p4 }
  0x64   : > { %p1790_p10 = pnand %p1789_p6, %p1783_p5 }
  0x66   : > { %1793 = shalt.err (!%p1790_p10)
}
  0x67   : > { %s2345_s8 = smov 8   ;;  %s2346_s11 = smov 128  }
  0x68   : > { %1620 = dma.hbm_to_vmem [thread:$0]  (!%p2091_p11), %s2087_s10, 256, %s2089_s28, %s2102_s15, %s2346_s11, %s2346_s11, %s2345_s8  }
  0x69   : > { %s234_s13 = sand.u32 1, %s1902_s21   ;;  %s1794_s6 = scalar_lea.hbm %s2098_s17, 256 }
  0x6a   : > { %s2137_s14 = scalar_lea.sflag [#allocation6], %s234_s13  ;;  %p1795_p4 = scmp.ne.s32.totalorder %s2098_s17, %s1794_s6 }
  0x6b   : > { %s1799_s16 = scalar_lea.hbm %s2322_s1, 512  ;;  %p1800_p3 = scmp.lt.u32.totalorder %s2098_s17, %s2322_s1 }
  0x6c   : > { %p1797_p5 = pnand %p1795_p4, %p1766_p0  ;;  %p1801_p7 = scmp.lt.u32.totalorder %s1799_s16, %s1794_s6 }
  0x6d   : > { %p1803_p12 = scmp.lt.u32.totalorder %s1794_s6, %s2098_s17 }
  0x6e   : > { %p1798_p2 = pneg %p1797_p5  ;;  %p1802_p9 = por %p1801_p7, %p1800_p3 }
  0x70   : > { %p1804_p1 = por %p1803_p12, %p1802_p9 }
  0x72   : > { %p1805_p13 = pnand %p1804_p1, %p1798_p2 }
  0x74   : > { %1808 = shalt.err (!%p1805_p13)
}
  0x75   : > { %s1809_s15 = scalar_lea.vmem %s2134_s9, 256  ;;  %s1909_s10 = smov [#allocation5]  }
  0x76   : > { %p1810_p6 = scmp.ne.s32.totalorder %s2134_s9, %s1809_s15  ;;  %s1814_s28 = sshll.u32 %s1909_s10, 4  ;;  %s1815_s28 = int_to_ptr.vmem [resolvable:$false] %s1814_s28 }
  0x77   : > { %s1816_s0 = scalar_lea.vmem %s1815_s28, 512  ;;  %p1817_p5 = scmp.lt.s32.totalorder %s2134_s9, %s1815_s28 }
  0x78   : > { %p1812_p10 = pnand %p1810_p6, %p1766_p0  ;;  %p1818_p3 = scmp.lt.s32.totalorder %s1816_s0, %s1809_s15 }
  0x7a   : > { %p1813_p4 = pneg %p1812_p10  ;;  %p1819_p7 = por %p1818_p3, %p1817_p5 }
  0x7c   : > { %p1820_p9 = pnand %p1819_p7, %p1813_p4 }
  0x7e   : > { %1823 = shalt.err (!%p1820_p9)
}
  0x7f   : > { %1623 = dma.hbm_to_vmem [thread:$0]  (!%p2091_p11), %s2098_s17, 256, %s2134_s9, %s2137_s14, %s2346_s11, %s2346_s11, %s2345_s8  }
  0x80   : > { %257 = sbr.rel (%p1988_p8) target bundleno = 1864 (0x748), region = 40  ;;  %s2169_s13 = sand.u32 (!%p1988_p8), 1, %s1894_s19  }
  0x81   : > { %s2172_s6 = sshll.u32 (!%p1988_p8), %s2169_s13, 4  ;;  %s260_s12 = scalar_lea.sflag (!%p1988_p8), [#allocation3], %s2169_s13 }
  0x82   : > { %s263_s30 = scalar_lea.vmem (!%p1988_p8), [#allocation2], %s2172_s6  ;;  %p2347_p0 = scmp.ne.s32.totalorder (!%p1988_p8), %s2336_s24, 0 }
  0x87   : > { %1869 = dma.done.wait (%p2347_p0), %s260_s12, 256  }
  0x88   : > { %1871 = vsyncadd (%p2347_p0), %s260_s12, 4294967040  ;;  %s268_s26 = sand.u32 1, %s1969_s22   ;;  %s272_s9 = scalar_lea.vmem [#allocation5], %s2172_s6 }
  0x89   : > { %s269_s17 = scalar_lea.sflag [#allocation6], %s268_s26 }
  0x8a   : > { %1873 = dma.done.wait (%p2347_p0), %s269_s17, 256  }
  0x8b   : > { %1875 = vsyncadd (%p2347_p0), %s269_s17, 4294967040  ;;  %p2348_p8 = scmp.eq.s32.totalorder %s1969_s22, 0 }
  0x8d   : > { %1877 = dma.done.wait (%p2348_p8), [#allocation6], 512   ;;  %p2349_p11 = pmov %p2348_p8 }
  0x8e   : > { %p2350_p2 = pmov %p2348_p8 }
  0x8f   : > { %1879 = vsyncadd (%p2349_p11), [#allocation6], 4294966784 }
  0x90   : > { %1881 = dma.done.wait (%p2350_p2), [#allocation9], 512   ;;  %p2351_p12 = pmov %p2350_p2 }
  0x91   : > { %vm331_vm0 = vcmask 261120   ;;  %v316_v0 = vld [vmem:[#allocation7] sm:$0xff]  ;;  %v317_v1 = vld [vmem:[#allocation7 + $0x8] sm:$0xff]  ;;  %v318_v2 = vld [vmem:[#allocation7 + $0x10] sm:$0xff]  ;;  %vm494_vm1 = vcmask 64512   ;;  %s1910_s11 = smov 120  }
  0x92   : > { %1883 = vsyncadd (%p2351_p12), [#allocation9], 4294966784  ;;  %v1540_v3 = vpack.c.bf16 %v317_v1, %v316_v0  ;;  %v319_v4 = vld [vmem:[#allocation7 + $0x18] sm:$0xff]  ;;  %v312_v5 = vld [vmem:[%s263_s30] sm:$0xff]  ;;  %s1911_s14 = smov 112   ;;  %s1912_s2 = smov 104  }
  0x93   : > { %v1544_v6 = vpack.c.bf16 %v319_v4, %v318_v2  ;;  %1470 = vmatprep.mubr.msk.f32.mxu0 %vm331_vm0, %v312_v5  ;;  %v321_v7 = vld [vmem:[#allocation8] sm:$0xff]  ;;  %v322_v8 = vld [vmem:[#allocation8 + $0x8] sm:$0xff]  ;;  %v323_v11 = vld [vmem:[#allocation8 + $0x10] sm:$0xff]  ;;  %vm584_vm3 = vcmask 130048   ;;  %s1913_s16 = smov 8   ;;  %s1914_s7 = smov 16  }
  0x94   : > { %1541 = vmatprep.subr.bf16.mxu0 %v1540_v3  ;;  %v1548_v9 = vpack.c.bf16 %v322_v8, %v321_v7  ;;  %v313_v10 = vld [vmem:[%s263_s30 + $0x8] sm:$0xff]  ;;  %v1381_v14 = vld [vmem:[%s2324_s3] ss:$0 sm:$0xff]  ;;  %vm2201_vm2 = vmpackc.low %vm494_vm1, %vm494_vm1  ;;  %s1915_s15 = smov 24   ;;  %vm1228_vm4 = vcmask 195584   ;;  %s1417_s10 = sshll.u32 %s1969_s22, 8 }
  0x95   : > { %1543 = vmatpush3.bf16.msra.mxu0 %v1540_v3  ;;  %v324_v12 = vld [vmem:[#allocation8 + $0x18] sm:$0xff]  ;;  %v2223_v34 = vld [vmem:[%s272_s9] sm:$0xff]  ;;  %s311_s28 = scalar_lea.vmem [#allocation10], %s2172_s6  ;;  %s2272_s22 = scalar_lea.hbm %s2326_s5, %s1417_s10 }
  0x96   : > { %1545 = vmatprep.subr.bf16.mxu0 %v1544_v6  ;;  %1549 = vmatprep.subr.bf16.mxu1 %v1548_v9  ;;  %v1552_v13 = vpack.c.bf16 %v324_v12, %v323_v11  ;;  %v2219_v33 = vld [vmem:[%s272_s9 + $0x8] sm:$0xff]  ;;  %s1249_s0 = sshll.u32 %s311_s28, 4  ;;  %s1236_s6 = scalar_lea.sflag [#allocation4], %s2169_s13  ;;  %s2274_s0 = int_to_ptr.vmem [resolvable:$true] %s1249_s0 }
  0x97   : > { %1551 = vmatpush3.bf16.msra.mxu1 %v1548_v9  ;;  %s1824_s26 = scalar_lea.vmem %s2274_s0, 256  ;;  %p2354_p13 = scmp.ne.s32.totalorder %s2342_s23, 0 }
  0x98   : > { %1553 = vmatprep.subr.bf16.mxu1 %v1552_v13  ;;  %p1825_p1 = scmp.ne.s32.totalorder %s2274_s0, %s1824_s26  ;;  %s1916_s17 = smov [#allocation10]  }
  0x99   : > { %1547 = vmatpush3.bf16.msra.mxu0 %v1544_v6  ;;  %s1828_s9 = sshll.u32 %s1916_s17, 4  ;;  %s1829_s9 = int_to_ptr.vmem [resolvable:$false] %s1828_s9 }
  0x9a   : > { %p1826_p6 = pnand %p1825_p1, %p2354_p13  ;;  %s1830_s24 = scalar_lea.vmem %s1829_s9, 512 }
  0x9b   : > { %1555 = vmatpush3.bf16.msra.mxu1 %v1552_v13  ;;  %p1831_p4 = scmp.lt.s32.totalorder %s2274_s0, %s1829_s9  ;;  %p1832_p5 = scmp.lt.s32.totalorder %s1830_s24, %s1824_s26 }
  0x9c   : > { %1471 = vmatmul.mubr.msk.f32.vlgmr.msra.gmra.mrb[0].mxu0 %vm331_vm0, %v313_v10  ;;  %p1827_p10 = pneg %p1826_p6 }
  0x9d   : > { %p1833_p3 = por %p1832_p5, %p1831_p4 }
  0x9f   : > { %p1834_p7 = pnand %p1833_p3, %p1827_p10 }
 0x16f   : > { %v1472_v15 = vpop.f32.mrb[0].mxu0 }
 0x170   : > { %v410_v16 = vadd.f32 %v1472_v15, %v1381_v14  ;;  %v404_v17 = vpop.f32.mrb[1].mxu0 }
 0x171   : > { %v405_v18 = vadd.f32 %v1381_v14, %v404_v17 }
 0x173   : > { %1481 = vmatprep.mubr.msk.f32.mxu1 %vm331_vm0, %v405_v18  ;;  %v1677_v20 = vpack.i.bf16 %v410_v16, %v405_v18  ;;  %v1556_v21 = vpack.c.bf16 %v410_v16, %v405_v18 }
 0x174   : > { %1482 = vmatmul.mubr.msk.f32.vlgmr.msra.gmra.mrb[0].mxu1 %vm331_vm0, %v410_v16 }
 0x175   : > { %1678 = vrot.lane.b32.xlu0 %v1677_v20, %s1910_s11  ;;  %1558 = vmatprep.subr.msk.bf16.mxu0 %vm2201_vm2, %v1556_v21 }
 0x176   : > { %1563 = vmatprep.subr.bf16.mxu1 %v1556_v21  ;;  %1561 = vmatpush3.bf16.xpose.msk.msra.mxu0 %vm2201_vm2, %v1556_v21 }
 0x177   : > { %1565 = vmatpush3.bf16.msra.mxu1 %v1556_v21 }
 0x1e7   : > { %v1679_v22 = vpop.permute.xlu0 %1678 }
 0x1e8   : > { %v1681_v23 = vunpack.i.h.bf16 %v1679_v22  ;;  %v1680_v24 = vunpack.i.l.bf16 %v1679_v22 }
 0x1ea   : > { %v1566_v25 = vpack.c.bf16 %v1681_v23, %v1680_v24 }
 0x1ec   : > { %1568 = vmatprep.subr.msk.bf16.mxu1 %vm2201_vm2, %v1566_v25  ;;  %1573 = vmatprep.subr.bf16.mxu0 %v1566_v25 }
 0x247   : > { %v1483_v26 = vpop.f32.mrb[0].mxu1 }
 0x248   : > { %668 = vrot.lane.b32.xlu1 %v1483_v26, %s1910_s11  ;;  %v485_v27 = vpop.f32.mrb[1].mxu1 }
 0x249   : > { %666 = vrot.lane.b32.xlu0 %v485_v27, %s1910_s11  ;;  %1488 = vmatprep.mubr.msk.f32.mxu0 %vm494_vm1, %v485_v27 }
 0x24a   : > { %1489 = vmatmul.mubr.msk.f32.vlgmr.msra.gmra.mrb[2].mxu0 %vm494_vm1, %v1483_v26 }
 0x24b   : > { %1575 = vmatpush3.bf16.msra.mxu0 %v1566_v25 }
 0x24c   : > { %1683 = vrot.lane.b32.xlu1 %v1677_v20, %s1911_s14 }
 0x24d   : > { %844 = vrot.lane.b32.xlu0 %v485_v27, %s1911_s14 }
 0x250   : > { %846 = vrot.lane.b32.xlu1 %v1483_v26, %s1911_s14 }
 0x251   : > { %1688 = vrot.lane.b32.xlu0 %v1677_v20, %s1912_s2 }
 0x254   : > { %1022 = vrot.lane.b32.xlu1 %v485_v27, %s1912_s2 }
 0x255   : > { %1024 = vrot.lane.b32.xlu0 %v1483_v26, %s1912_s2 }
 0x2ba   : > { %v669_v28 = vpop.permute.xlu1 %668 }
 0x2bb   : > { %v667_v39 = vpop.permute.xlu0 %666 }
 0x2be   : > { %v1684_v29 = vpop.permute.xlu1 %1683 }
 0x2bf   : > { %v1686_v30 = vunpack.i.h.bf16 %v1684_v29  ;;  %v1685_v31 = vunpack.i.l.bf16 %v1684_v29  ;;  %v845_v40 = vpop.permute.xlu0 %844 }
 0x2c1   : > { %v1576_v32 = vpack.c.bf16 %v1686_v30, %v1685_v31 }
 0x2c2   : > { %v847_v55 = vpop.permute.xlu1 %846 }
 0x2c3   : > { %1578 = vmatprep.subr.msk.bf16.mxu0 %vm2201_vm2, %v1576_v32  ;;  %v1689_v43 = vpop.permute.xlu0 %1688 }
 0x2c4   : > { %v1691_v44 = vunpack.i.h.bf16 %v1689_v43  ;;  %v1690_v45 = vunpack.i.l.bf16 %v1689_v43 }
 0x2c6   : > { %v1586_v46 = vpack.c.bf16 %v1691_v44, %v1690_v45  ;;  %v1023_v0 = vpop.permute.xlu1 %1022 }
 0x2c7   : > { %v1025_v1 = vpop.permute.xlu0 %1024 }
 0x31d   : > { %v1490_v35 = vpop.f32.mrb[2].mxu0 }
 0x31e   : > { %v581_v36 = vmul.f32 %v1490_v35, %v2219_v33  ;;  %v571_v37 = vpop.f32.mrb[3].mxu0 }
 0x31f   : > { %v580_v38 = vmul.f32 %v571_v37, %v2223_v34 }
 0x321   : > { %1692 = vtanh.f32 %v580_v38 }
 0x322   : > { %1694 = vtanh.f32 %v581_v36 }
 0x32b   : > { %v1693_v41 = vpop.eup %1692 }
 0x32c   : > { %v1695_v42 = vpop.eup %1694  ;;  %1495 = vmatprep.mubr.msk.f32.mxu1 %vm584_vm3, %v1693_v41 }
 0x32d   : > { %1496 = vmatmul.mubr.msk.f32.vlgmr.msra.gmra.mrb[2].mxu1 %vm584_vm3, %v1695_v42 }
 0x32e   : > { %1571 = vmatpush3.bf16.xpose.msk.msra.mxu1 %vm2201_vm2, %v1566_v25  ;;  %1502 = vmatprep.mubr.msk.f32.mxu1 %vm494_vm1, %v667_v39 }
 0x32f   : > { %1583 = vmatprep.subr.bf16.mxu1 %v1576_v32 }
 0x335   : > { %1503 = vmatmul.mubr.msk.f32.vlgmr.msra.gmra.mrb[4].mxu1 %vm494_vm1, %v669_v28 }
 0x336   : > { %1585 = vmatpush3.bf16.msra.mxu1 %v1576_v32 }
 0x337   : > { %1588 = vmatprep.subr.msk.bf16.mxu1 %vm2201_vm2, %v1586_v46 }
 0x400   : > { %v2235_v47 = vpop.f32.mrb[2].mxu1 }
 0x401   : > { %v2237_v48 = vpop.f32.mrb[3].mxu1 }
 0x408   : > { %v1504_v49 = vpop.f32.mrb[4].mxu1 }
 0x409   : > { %v758_v50 = vmul.f32 %v1504_v49, %v2219_v33  ;;  %v748_v51 = vpop.f32.mrb[5].mxu1 }
 0x40a   : > { %v757_v52 = vmul.f32 %v748_v51, %v2223_v34 }
 0x40c   : > { %1696 = vtanh.f32 %v757_v52 }
 0x40d   : > { %1698 = vtanh.f32 %v758_v50 }
 0x416   : > { %v1697_v53 = vpop.eup %1696 }
 0x417   : > { %v1699_v54 = vpop.eup %1698  ;;  %1509 = vmatprep.mubr.msk.f32.mxu0 %vm584_vm3, %v1697_v53 }
 0x418   : > { %1510 = vmatmul.mubr.msk.f32.vlgmr.msra.gmra.mrb[4].mxu0 %vm584_vm3, %v1699_v54 }
 0x419   : > { %1581 = vmatpush3.bf16.xpose.msk.msra.mxu0 %vm2201_vm2, %v1576_v32  ;;  %1516 = vmatprep.mubr.msk.f32.mxu0 %vm494_vm1, %v845_v40 }
 0x41a   : > { %1593 = vmatprep.subr.bf16.mxu0 %v1586_v46 }
 0x420   : > { %1517 = vmatmul.mubr.msk.f32.vlgmr.msra.gmra.mrb[6].mxu0 %vm494_vm1, %v847_v55 }
 0x421   : > { %1595 = vmatpush3.bf16.msra.mxu0 %v1586_v46 }
 0x4eb   : > { %v1511_v56 = vpop.f32.mrb[4].mxu0 }
 0x4ec   : > { %1204 = vrot.lane.b32.xlu0 %v1511_v56, %s1913_s16  ;;  %v835_v57 = vpop.f32.mrb[5].mxu0 }
 0x4ed   : > { %1202 = vrot.lane.b32.xlu1 %v835_v57, %s1913_s16 }
 0x4f3   : > { %v1518_v58 = vpop.f32.mrb[6].mxu0 }
 0x4f4   : > { %v936_v59 = vmul.f32 %v1518_v58, %v2219_v33  ;;  %v926_v60 = vpop.f32.mrb[7].mxu0 }
 0x4f5   : > { %v935_v61 = vmul.f32 %v926_v60, %v2223_v34 }
 0x4f7   : > { %1700 = vtanh.f32 %v935_v61 }
 0x4f8   : > { %1702 = vtanh.f32 %v936_v59 }
 0x501   : > { %v1701_v62 = vpop.eup %1700 }
 0x502   : > { %v1703_v63 = vpop.eup %1702  ;;  %1523 = vmatprep.mubr.msk.f32.mxu1 %vm584_vm3, %v1701_v62 }
 0x503   : > { %1524 = vmatmul.mubr.msk.f32.vlgmr.msra.gmra.mrb[6].mxu1 %vm584_vm3, %v1703_v63 }
 0x504   : > { %1591 = vmatpush3.bf16.xpose.msk.msra.mxu1 %vm2201_vm2, %v1586_v46  ;;  %1530 = vmatprep.mubr.msk.f32.mxu1 %vm494_vm1, %v1023_v0 }
 0x50b   : > { %1531 = vmatmul.mubr.msk.f32.vlgmr.msra.gmra.mrb[8].mxu1 %vm494_vm1, %v1025_v1 }
 0x55e   : > { %v1205_v12 = vpop.permute.xlu0 %1204 }
 0x55f   : > { %v1203_v13 = vpop.permute.xlu1 %1202  ;;  %v1225_v16 = vsel %vm494_vm1, %v2235_v47, %v1205_v12 }
 0x560   : > { %v1224_v17 = vsel %vm494_vm1, %v2237_v48, %v1203_v13 }
 0x5d6   : > { %v1525_v2 = vpop.f32.mrb[6].mxu1 }
 0x5d7   : > { %1212 = vrot.lane.b32.xlu0 %v1525_v2, %s1914_s7  ;;  %v1013_v3 = vpop.f32.mrb[7].mxu1 }
 0x5d8   : > { %1210 = vrot.lane.b32.xlu1 %v1013_v3, %s1914_s7 }
 0x5de   : > { %v1532_v4 = vpop.f32.mrb[8].mxu1 }
 0x5df   : > { %v1114_v5 = vmul.f32 %v1532_v4, %v2219_v33  ;;  %v1104_v6 = vpop.f32.mrb[9].mxu1 }
 0x5e0   : > { %v1113_v7 = vmul.f32 %v1104_v6, %v2223_v34 }
 0x5e2   : > { %1704 = vtanh.f32 %v1113_v7 }
 0x5e3   : > { %1706 = vtanh.f32 %v1114_v5 }
 0x5ec   : > { %v1705_v8 = vpop.eup %1704 }
 0x5ed   : > { %v1707_v9 = vpop.eup %1706  ;;  %1537 = vmatprep.mubr.msk.f32.mxu0 %vm584_vm3, %v1705_v8 }
 0x5ee   : > { %1538 = vmatmul.mubr.msk.f32.vlgmr.msra.gmra.mrb[8].mxu0 %vm584_vm3, %v1707_v9 }
 0x649   : > { %v1213_v14 = vpop.permute.xlu0 %1212 }
 0x64a   : > { %v1211_v15 = vpop.permute.xlu1 %1210  ;;  %v1227_v18 = vsel %vm584_vm3, %v1225_v16, %v1213_v14 }
 0x64b   : > { %v1226_v20 = vsel %vm584_vm3, %v1224_v17, %v1211_v15 }
 0x6c1   : > { %v1539_v10 = vpop.f32.mrb[8].mxu0 }
 0x6c2   : > { %1220 = vrot.lane.b32.xlu0 %v1539_v10, %s1915_s15  ;;  %v1191_v11 = vpop.f32.mrb[9].mxu0 }
 0x6c3   : > { %1218 = vrot.lane.b32.xlu1 %v1191_v11, %s1915_s15 }
 0x734   : > { %v1221_v19 = vpop.permute.xlu0 %1220 }
 0x735   : > { %v1230_v21 = vsel %vm1228_vm4, %v1227_v18, %v1221_v19  ;;  %v1219_v22 = vpop.permute.xlu1 %1218 }
 0x736   : > { %v1232_v23 = vmax.f32 %v1230_v21, 0.0  ;;  %v1229_v24 = vsel %vm1228_vm4, %v1226_v20, %v1219_v22 }
 0x737   : > { %v1231_v25 = vmax.f32 %v1229_v24, 0.0 }
 0x738   : > { %1234 = vst.msk [vmem:[%s311_s28 + $0x8] sm:$0xff] %vm331_vm0, %v1232_v23 }
 0x739   : > { %1233 = vst.msk [vmem:[%s311_s28] sm:$0xff] %vm331_vm0, %v1231_v25 }
 0x73a   : > { %1837 = shalt.err (!%p1834_p7)
}
 0x73b   : > { %s1838_s8 = scalar_lea.hbm %s2272_s22, 256  ;;  %s1842_s2 = scalar_lea.hbm %s2326_s5, 512 }
 0x73c   : > { %p1839_p9 = scmp.ne.s32.totalorder %s2272_s22, %s1838_s8  ;;  %p1843_p11 = scmp.lt.u32.totalorder %s2272_s22, %s2326_s5 }
 0x73d   : > { %p1844_p2 = scmp.lt.u32.totalorder %s1842_s2, %s1838_s8  ;;  %p1846_p1 = scmp.lt.u32.totalorder %s1838_s8, %s2272_s22 }
 0x73e   : > { %p1840_p0 = pnand %p1839_p9, %p2354_p13 }
 0x73f   : > { %p1845_p12 = por %p1844_p2, %p1843_p11 }
 0x740   : > { %p1841_p8 = pneg %p1840_p0 }
 0x741   : > { %p1847_p6 = por %p1846_p1, %p1845_p12 }
 0x743   : > { %p1848_p10 = pnand %p1847_p6, %p1841_p8 }
 0x745   : > { %1851 = shalt.err (!%p1848_p10)
}
 0x746   : > { %s1917_s10 = smov 128  }
 0x747   : > { %1608 = dma.vmem_to_hbm [thread:$0]  (%p2354_p13), %s2274_s0, 256, %s2272_s22, %s1236_s6, %s1917_s10, %s1917_s10, %s1913_s16  }
 0x748 PF: > { %s1264_s28 = sand.u32 1, %s1890_s18   ;;  %p2355_p4 = scmp.ne.s32.totalorder %s2337_s25, 0 }
 0x749   : > { %p2356_p5 = scmp.ge.s32.totalorder %s1902_s21, 2  ;;  %s1265_s12 = scalar_lea.sflag [#allocation4], %s1264_s28 }
 0x74b   : > { %p1625_p3 = pnand %p2356_p5, %p2355_p4 }
 0x74d   : > { %1885 = dma.done.wait (!%p1625_p3), %s1265_s12, 256  }
 0x74e   : > { %1887 = vsyncadd (!%p1625_p3), %s1265_s12, 4294967040  ;;  %p22_p7 = scmp.ge.s32.totalorder %s2064_s29, 4   ;;  %s2357_s18 = smov %s1894_s19 }
 0x74f   : > { %s2358_s19 = smov %s1898_s20  ;;  %s2359_s20 = smov %s2080_s27 }
 0x750   : > { %s2360_s21 = smov %s2064_s29  ;;  %24 = sbr.rel (!%p22_p7) target bundleno = 11 (0xb), region = 106 }
 0x757   :  { %1270 = vsyncpa [#allocation3], 1 }
 0x758   :  { %1272 = vsyncpa [#allocation3 + $0x1], 1 }
 0x759   :  { %1273 = vsyncpa [#allocation6], 1 }
 0x75a   :  { %1275 = vsyncpa [#allocation6 + $0x1], 1 }
 0x75b   :  { %1276 = vsyncpa [#allocation9], 1 }
 0x75c   :  { %1277 = vsyncpa [#allocation4], 1 }
 0x75d   :  { %1279 = vsyncpa [#allocation4 + $0x1], 1 }

</bundles_post_ra>
